<compile_context>
chip_gen: v7x
topology: tpu7x:2x2x1
jax: 0.10.0
libtpu: 0.0.40
codegen_flags: <defaults>
</compile_context>

<pallas_src>
import functools

import jax
import jax.numpy as jnp
from jax.experimental import pallas as pl
from jax.experimental.pallas import tpu as pltpu


def _pick_tile(hw, c, logits_itemsize, needs_map, max_tile=16384,
               budget_bytes=8 << 20):
    """Largest lane tile (multiple of 128) keeping double-buffered blocks in budget."""
    bytes_per_lane = c * logits_itemsize + 4 + (4 if needs_map else 0)
    cap = budget_bytes // (2 * max(1, bytes_per_lane))   # 2x: double buffering
    cap = max(128, (cap // 128) * 128)
    tile = min(max_tile, cap)
    if hw <= tile:
        return hw                   # single full-dim block per image (always legal)
    return tile


def _per_pixel_loss(w, x, t, gamma):
    """w: (C, 1) f32 class weights; x: (C, TP) logits; t: (1, TP) int32 targets.

    Returns (1, TP) f32 focal loss (0 where t == -1, the ignore_index)."""
    x = x.astype(jnp.float32)
    m = jnp.max(x, axis=0, keepdims=True)                          # (1, TP)
    z = x - m
    lse = jnp.log(jnp.sum(jnp.exp(z), axis=0, keepdims=True))      # (1, TP), >= 0
    logsoft = z - lse                                              # (C, TP)

    C, TP = x.shape
    cls = jax.lax.broadcasted_iota(jnp.int32, (C, TP), 0)
    onehot = (cls == t).astype(jnp.float32)                        # all-zero col if t == -1

    # Fused weighted NLL pick:  -w_t * log p_t   (0 at ignored pixels).
    ce = -jnp.sum((w * logsoft) * onehot, axis=0, keepdims=True)   # (1, TP)

    # max_c log_softmax == -lse  (max_c z == 0 by construction) -> focal = 1 + lse.
    focal = 1.0 + lse
    if gamma == 2.0:
        mod = focal * focal
    elif gamma == 1.0:
        mod = focal
    else:
        mod = focal ** gamma
    return mod * ce


def _focal_reduce_kernel(w_ref, x_ref, t_ref, sum_ref, *, gamma, hw, tile_p):
    """Accumulates per-image loss sum. sum_ref: (1,1), resident across the tile axis."""
    i = pl.program_id(1)
    loss = _per_pixel_loss(w_ref[...], x_ref[...], t_ref[...], gamma)

    if hw % tile_p != 0:
        # Mask garbage lanes of the final (partial) tile; select drops any NaN.
        lane = jax.lax.broadcasted_iota(jnp.int32, loss.shape, 1)
        loss = jnp.where(lane + i * tile_p < hw, loss, 0.0)

    @pl.when(i == 0)
    def _():
        sum_ref[...] = jnp.zeros_like(sum_ref)

    sum_ref[...] += jnp.sum(loss, keepdims=True)


def _focal_map_kernel(w_ref, x_ref, t_ref, loss_ref, *, gamma):
    """Per-pixel loss map kernel (reduction='none')."""
    loss_ref[...] = _per_pixel_loss(w_ref[...], x_ref[...], t_ref[...], gamma)


def focal_loss_2d(logits, target, gamma=2.0, ce_weights=(1.0, 1.0),
                  reduction="mean", tile_p=None):
    """logits: (N, C, H, W); target: (N, H, W) int (class index, or -1 = ignore)."""
    N, C, H, W = logits.shape
    HW = H * W

    # Free, contiguous relayouts (no transpose, no extra HBM pass, no dtype upcast).
    x = logits.reshape(N, C, HW)
    t = target.reshape(N, 1, HW).astype(jnp.int32)
    w = jnp.asarray(ce_weights, jnp.float32).reshape(C, 1)

    if tile_p is None:
        tile_p = _pick_tile(HW, C, jnp.dtype(x.dtype).itemsize,
                            needs_map=(reduction == "none"))
    n_tiles = pl.cdiv(HW, tile_p)
    grid = (N, n_tiles)

    in_specs = [
        pl.BlockSpec((C, 1), lambda n, i: (0, 0)),                 # class weights (resident)
        pl.BlockSpec((None, C, tile_p), lambda n, i: (n, 0, i)),   # logits tile
        pl.BlockSpec((None, 1, tile_p), lambda n, i: (n, 0, i)),   # target tile
    ]

    if reduction in ("mean", "sum"):
        kernel = functools.partial(_focal_reduce_kernel, gamma=float(gamma),
                                   hw=HW, tile_p=tile_p)
        partial_sums = pl.pallas_call(
            kernel,
            out_shape=jax.ShapeDtypeStruct((N, 1, 1), jnp.float32),
            grid_spec=pltpu.PrefetchScalarGridSpec(
                num_scalar_prefetch=0,
                grid=grid,
                in_specs=in_specs,
                out_specs=pl.BlockSpec((None, 1, 1), lambda n, i: (n, 0, 0)),
            ),
            compiler_params=pltpu.CompilerParams(
                dimension_semantics=("parallel", "arbitrary")),
        )(w, x, t)
        total = jnp.sum(partial_sums)
        if reduction == "mean":
            # Matches the module: loss.mean() over ALL N*H*W pixels (ignored -> 0).
            return total / (N * HW)
        return total

    elif reduction == "none":
        kernel = functools.partial(_focal_map_kernel, gamma=float(gamma))
        loss_map = pl.pallas_call(
            kernel,
            out_shape=jax.ShapeDtypeStruct((N, 1, HW), jnp.float32),
            grid_spec=pltpu.PrefetchScalarGridSpec(
                num_scalar_prefetch=0,
                grid=grid,
                in_specs=in_specs,
                out_specs=pl.BlockSpec((None, 1, tile_p), lambda n, i: (n, 0, i)),
            ),
            compiler_params=pltpu.CompilerParams(
                dimension_semantics=("parallel", "parallel")),
        )(w, x, t)
        return loss_map.reshape(N, H, W)

    else:
        raise ValueError(f"unknown reduction {reduction!r}")


def _ref_focal_map(logits, target, gamma, ce_weights):
    """Pure-JAX reference for the per-pixel focal loss map."""
    C = logits.shape[1]
    logsoft = jax.nn.log_softmax(logits.astype(jnp.float32), axis=1)
    valid = target >= 0
    tgt = jnp.clip(target, 0, C - 1)
    picked = jnp.take_along_axis(logsoft, tgt[:, None], axis=1)[:, 0]
    wvec = jnp.asarray(ce_weights, jnp.float32)
    ce = jnp.where(valid, -picked * wvec[tgt], 0.0)
    return ((1.0 - jnp.max(logsoft, axis=1)) ** gamma) * ce


if __name__ == "__main__":
    key = jax.random.PRNGKey(0)

    # Case 1: module default-style shapes (ce_weights has 2 entries -> 2 classes).
    k1, k2, k3, k4 = jax.random.split(key, 4)
    N, C, H, W = 2, 2, 16, 16
    gamma = 2.0
    ce_weights = (1.0, 2.0)
    logits = jax.random.normal(k1, (N, C, H, W), jnp.float32)
    target = jax.random.randint(k2, (N, H, W), -1, C)   # -1 exercises ignore_index

    ref_map = _ref_focal_map(logits, target, gamma, ce_weights)

    out_mean = jax.block_until_ready(
        focal_loss_2d(logits, target, gamma=gamma, ce_weights=ce_weights,
                      reduction="mean"))
    out_sum = jax.block_until_ready(
        focal_loss_2d(logits, target, gamma=gamma, ce_weights=ce_weights,
                      reduction="sum"))
    out_map = jax.block_until_ready(
        focal_loss_2d(logits, target, gamma=gamma, ce_weights=ce_weights,
                      reduction="none"))

    assert jnp.allclose(out_mean, ref_map.mean(), atol=1e-5, rtol=1e-5), \
        (float(out_mean), float(ref_map.mean()))
    assert jnp.allclose(out_sum, ref_map.sum(), atol=1e-4, rtol=1e-5), \
        (float(out_sum), float(ref_map.sum()))
    assert jnp.allclose(out_map, ref_map, atol=1e-5, rtol=1e-5)

    # Case 2: non-multiple-of-128 pixel count with a forced small tile, to
    # exercise the partial-tile lane masking path (3 classes, odd spatial size).
    N2, C2, H2, W2 = 1, 3, 10, 13
    ce_w2 = (1.0, 0.5, 2.0)
    logits2 = jax.random.normal(k3, (N2, C2, H2, W2), jnp.float32)
    target2 = jax.random.randint(k4, (N2, H2, W2), -1, C2)
    ref_map2 = _ref_focal_map(logits2, target2, gamma, ce_w2)

    out_sum2 = jax.block_until_ready(
        focal_loss_2d(logits2, target2, gamma=gamma, ce_weights=ce_w2,
                      reduction="sum", tile_p=128))
    out_map2 = jax.block_until_ready(
        focal_loss_2d(logits2, target2, gamma=gamma, ce_weights=ce_w2,
                      reduction="none", tile_p=128))

    assert jnp.allclose(out_sum2, ref_map2.sum(), atol=1e-4, rtol=1e-5), \
        (float(out_sum2), float(ref_map2.sum()))
    assert jnp.allclose(out_map2, ref_map2, atol=1e-5, rtol=1e-5)

    print("KERNEL_OK")
</pallas_src>

<mosaic_0001>
module attributes {stable_mosaic.version = 11 : i64} {
  func.func @_focal_reduce_kernel(%arg0: i32, %arg1: i32, %arg2: memref<2x1xf32, #tpu.memory_space<vmem>>, %arg3: memref<1x2x256xf32, #tpu.memory_space<vmem>>, %arg4: memref<1x1x256xi32, #tpu.memory_space<vmem>>, %arg5: memref<1x1x1xf32, #tpu.memory_space<vmem>>) attributes {dimension_semantics = [#tpu.dimension_semantics<parallel>, #tpu.dimension_semantics<arbitrary>], iteration_bounds = array<i64: 2, 1>, scalar_prefetch = 0 : i64, scratch_operands = 0 : i64, tpu.core_type = #tpu.core_type<tc>, window_params = [{pipeline_mode = #tpu.pipeline_mode<synchronous>, transform_indices = @transform_0, window_bounds = array<i64: 2, 1>}, {transform_indices = @transform_1, window_bounds = array<i64: 1, 2, 256>}, {transform_indices = @transform_2, window_bounds = array<i64: 1, 1, 256>}, {transform_indices = @transform_3, window_bounds = array<i64: 1, 1, 1>}]} {
    %c0 = arith.constant 0 : index
    %c0_0 = arith.constant 0 : index
    %0 = vector.load %arg2[%c0, %c0_0] : memref<2x1xf32, #tpu.memory_space<vmem>>, vector<2x1xf32>
    %c0_1 = arith.constant 0 : index
    %c0_2 = arith.constant 0 : index
    %c0_3 = arith.constant 0 : index
    %1 = vector.load %arg3[%c0_1, %c0_2, %c0_3] : memref<1x2x256xf32, #tpu.memory_space<vmem>>, vector<1x2x256xf32>
    %2 = vector.shape_cast %1 : vector<1x2x256xf32> to vector<2x256xf32>
    %c0_4 = arith.constant 0 : index
    %c0_5 = arith.constant 0 : index
    %c0_6 = arith.constant 0 : index
    %3 = vector.load %arg4[%c0_4, %c0_5, %c0_6] : memref<1x1x256xi32, #tpu.memory_space<vmem>>, vector<1x1x256xi32>
    %4 = vector.shape_cast %3 : vector<1x1x256xi32> to vector<1x256xi32>
    %cst = arith.constant dense<0xFF800000> : vector<256xf32>
    %5 = vector.multi_reduction <maximumf>, %2, %cst [0] : vector<2x256xf32> to vector<256xf32>
    %6 = vector.shape_cast %5 : vector<256xf32> to vector<1x256xf32>
    %7 = vector.broadcast %6 : vector<1x256xf32> to vector<2x256xf32>
    %8 = arith.subf %2, %7 : vector<2x256xf32>
    %9 = math.exp %8 : vector<2x256xf32>
    %cst_7 = arith.constant dense<0.000000e+00> : vector<256xf32>
    %10 = vector.multi_reduction <add>, %9, %cst_7 [0] : vector<2x256xf32> to vector<256xf32>
    %11 = vector.shape_cast %10 : vector<256xf32> to vector<1x256xf32>
    %12 = math.log %11 : vector<1x256xf32>
    %13 = vector.broadcast %12 : vector<1x256xf32> to vector<2x256xf32>
    %14 = arith.subf %8, %13 : vector<2x256xf32>
    %15 = tpu.iota {dimensions = array<i32: 0>} : vector<2x256xi32>
    %16 = vector.broadcast %4 : vector<1x256xi32> to vector<2x256xi32>
    %17 = arith.cmpi eq, %15, %16 : vector<2x256xi32>
    %18 = arith.extui %17 : vector<2x256xi1> to vector<2x256xi32>
    %19 = arith.sitofp %18 : vector<2x256xi32> to vector<2x256xf32>
    %20 = vector.broadcast %0 : vector<2x1xf32> to vector<2x256xf32>
    %21 = arith.mulf %20, %14 : vector<2x256xf32>
    %22 = arith.mulf %21, %19 : vector<2x256xf32>
    %cst_8 = arith.constant dense<0.000000e+00> : vector<256xf32>
    %23 = vector.multi_reduction <add>, %22, %cst_8 [0] : vector<2x256xf32> to vector<256xf32>
    %24 = vector.shape_cast %23 : vector<256xf32> to vector<1x256xf32>
    %cst_9 = arith.constant 0.000000e+00 : f32
    %25 = vector.broadcast %cst_9 : f32 to vector<1x256xf32>
    %26 = arith.subf %25, %24 : vector<1x256xf32>
    %cst_10 = arith.constant 1.000000e+00 : f32
    %27 = vector.broadcast %cst_10 : f32 to vector<1x256xf32>
    %28 = arith.addf %27, %12 : vector<1x256xf32>
    %29 = arith.mulf %28, %28 : vector<1x256xf32>
    %30 = arith.mulf %29, %26 : vector<1x256xf32>
    %c0_i32 = arith.constant 0 : i32
    %31 = arith.cmpi eq, %arg1, %c0_i32 : i32
    %32 = arith.extui %31 : i1 to i32
    %c0_i32_11 = arith.constant 0 : i32
    %33 = arith.cmpi ne, %32, %c0_i32_11 : i32
    scf.if %33 {
      %cst_19 = arith.constant 0.000000e+00 : f32
      %45 = vector.broadcast %cst_19 : f32 to vector<1x1xf32>
      %c0_20 = arith.constant 0 : index
      %c0_21 = arith.constant 0 : index
      %c0_22 = arith.constant 0 : index
      %46 = vector.load %arg5[%c0_20, %c0_21, %c0_22] : memref<1x1x1xf32, #tpu.memory_space<vmem>>, vector<1x1x1xf32>
      %47 = vector.shape_cast %46 : vector<1x1x1xf32> to vector<1x1xf32>
      %48 = vector.shape_cast %45 : vector<1x1xf32> to vector<1x1x1xf32>
      tpu.vector_store %arg5[%c0_20, %c0_21, %c0_22], %48 {strides = array<i32>} : memref<1x1x1xf32, #tpu.memory_space<vmem>>, vector<1x1x1xf32>,
    } else {
    }
    %c0_12 = arith.constant 0 : index
    %c0_13 = arith.constant 0 : index
    %c0_14 = arith.constant 0 : index
    %34 = vector.load %arg5[%c0_12, %c0_13, %c0_14] : memref<1x1x1xf32, #tpu.memory_space<vmem>>, vector<1x1x1xf32>
    %35 = vector.shape_cast %34 : vector<1x1x1xf32> to vector<1x1xf32>
    %36 = vector.shape_cast %30 : vector<1x256xf32> to vector<1x1x256xf32>
    %cst_15 = arith.constant dense<0.000000e+00> : vector<1xf32>
    %37 = vector.multi_reduction <add>, %36, %cst_15 [1, 2] : vector<1x1x256xf32> to vector<1xf32>
    %38 = vector.shape_cast %37 : vector<1xf32> to vector<1x1x1xf32>
    %39 = vector.extract %38[0, 0, 0] : f32 from vector<1x1x1xf32>
    %40 = vector.broadcast %39 : f32 to vector<1x1xf32>
    %41 = arith.addf %35, %40 : vector<1x1xf32>
    %c0_16 = arith.constant 0 : index
    %c0_17 = arith.constant 0 : index
    %c0_18 = arith.constant 0 : index
    %42 = vector.load %arg5[%c0_16, %c0_17, %c0_18] : memref<1x1x1xf32, #tpu.memory_space<vmem>>, vector<1x1x1xf32>
    %43 = vector.shape_cast %42 : vector<1x1x1xf32> to vector<1x1xf32>
    %44 = vector.shape_cast %41 : vector<1x1xf32> to vector<1x1x1xf32>
    tpu.vector_store %arg5[%c0_16, %c0_17, %c0_18], %44 {strides = array<i32>} : memref<1x1x1xf32, #tpu.memory_space<vmem>>, vector<1x1x1xf32>,
    return
  }
  func.func @transform_0(%arg0: i32, %arg1: i32) -> (i32, i32) {
    %c0_i32 = arith.constant 0 : i32
    %c0_i32_0 = arith.constant 0 : i32
    %c0_i32_1 = arith.constant 0 : i32
    return %c0_i32, %c0_i32_0 : i32, i32
  }
  func.func @transform_1(%arg0: i32, %arg1: i32) -> (i32, i32, i32) {
    %c0_i32 = arith.constant 0 : i32
    %c0_i32_0 = arith.constant 0 : i32
    return %arg0, %c0_i32, %arg1 : i32, i32, i32
  }
  func.func @transform_2(%arg0: i32, %arg1: i32) -> (i32, i32, i32) {
    %c0_i32 = arith.constant 0 : i32
    %c0_i32_0 = arith.constant 0 : i32
    return %arg0, %c0_i32, %arg1 : i32, i32, i32
  }
  func.func @transform_3(%arg0: i32, %arg1: i32) -> (i32, i32, i32) {
    %c0_i32 = arith.constant 0 : i32
    %c0_i32_0 = arith.constant 0 : i32
    %c0_i32_1 = arith.constant 0 : i32
    return %arg0, %c0_i32, %c0_i32_0 : i32, i32, i32
  }
}

</mosaic_0001>

<bundles_post_ra>
// kernel: tpu_custom_call.1
= control target key start
LH: loop header
LB: loop body
LE: loop exit
PB: predicated region body
PF: predicated region fallthrough
CT: control target
= control target key end

     0   :  { %8 = vsyncpa [#allocation3], 0  ;;  %s822_s0 = inlined_call_operand.vmem [shape: f32[2,1], index: 0, kind: input, shape index: {}]   ;;  %s823_s1 = inlined_call_operand.hbm [shape: f32[2,2,256], index: 1, kind: input, shape index: {}]   ;;  %s824_s2 = inlined_call_operand.vmem [shape: s32[2,1,256], index: 2, kind: input, shape index: {}]   ;;  %s825_s3 = inlined_call_operand.vmem [shape: f32[2,1,1], index: 3, kind: output, shape index: {}]  }
   0x1   :  { %10 = vsyncpa [#allocation3 + $0x1], 0  ;;  %s674_s12 = smov 0   ;;  %s676_s13 = smov 0  }
   0x2   :  { %s678_s14 = smov 0   ;;  %s680_s15 = smov 0  }
   0x3   :  { %s682_s16 = smov 0   ;;  %s684_s17 = smov 0  }
   0x4 LB: > { %s486_s18 = sadd.s32 4294967295, %s648_s17   ;;  %s28_s19 = sadd.s32 1, %s644_s16  ;;  %s648_s17 = sphi %s684_s17, %s16_s17   ;;  %s644_s16 = sphi %s682_s16, %s835_s16   ;;  %s640_s15 = sphi %s680_s15, %s834_s15   ;;  %s636_s14 = sphi %s678_s14, %s833_s14   ;;  %s632_s13 = sphi %s676_s13, %s832_s13   ;;  %s628_s12 = sphi %s674_s12, %s831_s12  }
   0x5   : > { %p30_p0 = scmp.ge.s32.totalorder %s28_s19, 2  ;;  %s58_s20 = sadd.s32 1, %s636_s14 }
   0x6   : > { %p65_p1 = scmp.ne.s32.totalorder %s636_s14, %s632_s13  ;;  %p66_p2 = scmp.eq.s32.totalorder %s648_s17, 0 }
   0x7   : > { %s837_s19 = smov (%p30_p0, %s28_s19), 0  ;;  %p71_p4 = scmp.ne.s32.totalorder %s632_s13, %s628_s12 }
   0x8   : > { %p710_p3 = por %p66_p2, %p65_p1  ;;  %s53_s22 = ssub.s32 %s644_s16, %s837_s19 }
   0x9   : > { %p72_p5 = scmp.eq.s32.totalorder %s486_s18, 0  ;;  %p56_p6 = scmp.eq.s32.totalorder %s53_s22, 0 }
   0xa   : > { %p509_p8 = scmp.lt.s32.totalorder %s648_s17, 2  ;;  %s152_s25 = sand.u32 1, %s636_s14  }
   0xb   : > { %p717_p7 = por %p72_p5, %p71_p4  ;;  %s500_s26 = sshll.u32 %s644_s16, 6 }
   0xc   : > { %s723_s24 = scalar_select %p56_p6, %s636_s14, %s58_s20  }
   0xd   : > { %s490_s27 = sshll.u32 %s152_s25, 2  ;;  %s730_s30 = scalar_lea.hbm %s823_s1, %s500_s26 }
   0xe   : > { %s156_s4 = scalar_lea.vmem [#allocation2], %s490_s27  ;;  %p734_p9 = pnand %p509_p8, %p710_p3 }
   0xf   : > { %s166_s5 = sshll.u32 %s156_s4, 4  ;;  %s153_s7 = scalar_lea.sflag [#allocation3], %s152_s25  ;;  %s738_s5 = int_to_ptr.vmem [resolvable:$true] %s166_s5 }
  0x10   : > { %s568_s8 = scalar_lea.hbm %s730_s30, 64  ;;  %p570_p13 = pneg %p734_p9 }
  0x11   : > { %p569_p12 = scmp.ne.s32.totalorder %s730_s30, %s568_s8  ;;  %s573_s11 = scalar_lea.hbm %s823_s1, 128 }
  0x12   : > { %p574_p2 = scmp.lt.u32.totalorder %s730_s30, %s823_s1  ;;  %p575_p3 = scmp.lt.u32.totalorder %s573_s11, %s568_s8 }
  0x13   : > { %p571_p0 = pnand %p570_p13, %p569_p12  ;;  %p577_p5 = scmp.lt.u32.totalorder %s568_s8, %s730_s30 }
  0x14   : > { %p576_p4 = por %p575_p3, %p574_p2 }
  0x15   : > { %p572_p1 = pneg %p571_p0 }
  0x16   : > { %p578_p6 = por %p577_p5, %p576_p4 }
  0x18   : > { %p579_p8 = pnand %p578_p6, %p572_p1 }
  0x1a   : > { %582 = shalt.err (!%p579_p8)
}
  0x1b   : > { %s583_s20 = scalar_lea.vmem %s738_s5, 64  ;;  %s650_s21 = smov [#allocation2]  }
  0x1c   : > { %p584_p12 = scmp.ne.s32.totalorder %s738_s5, %s583_s20  ;;  %s588_s22 = sshll.u32 %s650_s21, 4  ;;  %s589_s22 = int_to_ptr.vmem [resolvable:$false] %s588_s22 }
  0x1d   : > { %s590_s25 = scalar_lea.vmem %s589_s22, 128  ;;  %p591_p11 = scmp.lt.s32.totalorder %s738_s5, %s589_s22 }
  0x1e   : > { %p586_p0 = pnand %p584_p12, %p570_p13  ;;  %p592_p2 = scmp.lt.s32.totalorder %s590_s25, %s583_s20 }
  0x20   : > { %p587_p10 = pneg %p586_p0  ;;  %p593_p3 = por %p592_p2, %p591_p11 }
  0x22   : > { %p594_p4 = pnand %p593_p3, %p587_p10 }
  0x24   : > { %597 = shalt.err (!%p594_p4)
}
  0x25   : > { %508 = dma.hbm_to_vmem [thread:$0]  (!%p734_p9), %s730_s30, 64, %s738_s5, %s153_s7  }
  0x26   : > { %p829_p1 = scmp.lt.s32.totalorder %s648_s17, 3  ;;  %p830_p5 = scmp.ge.s32.totalorder %s648_s17, 1 }
  0x28   : > { %p184_p13 = pnand %p830_p5, %p829_p1 }
  0x29   : > { %s189_s26 = sand.u32 (!%p184_p13), 1, %s632_s13  }
  0x2a   : > { %187 = sbr.rel (%p184_p13) target bundleno = 412 (0x19c), region = 32  ;;  %s494_s27 = sshll.u32 (!%p184_p13), %s189_s26, 2 }
  0x2b   : > { %s190_s28 = scalar_lea.sflag (!%p184_p13), [#allocation3], %s189_s26  ;;  %s193_s29 = scalar_lea.vmem (!%p184_p13), [#allocation2], %s494_s27 }
  0x31   : > { %623 = dma.done.wait (%p717_p7), %s190_s28, 64  }
  0x32   : > { %625 = vsyncadd (%p717_p7), %s190_s28, 4294967232  ;;  %v242_v0 = vlaneseq  ;;  %v651_v1 = vmov 0   ;;  %v652_v2 = vmov 1983009808   ;;  %v235_v7 = vld [vmem:[%s822_s0] sm:$0x3] }
  0x33   : > { %561 = vset.pattern.permute.xlu0 %v651_v1  ;;  %v240_v3 = vunpack.c.l.s4 %v652_v2  ;;  %v236_v8 = vld [vmem:[%s193_s29] sm:$0xf]  ;;  %vm249_vm0 = vcmask 1041408   ;;  %p224_p7 = scmp.lt.s32.totalorder %s640_s15, 1  ;;  %v653_v60 = vmov 0.0   ;;  %vm384_vm3 = vcmask 1040384  }
  0x34   : > { %v776_v4 = vshrl.u32 %v242_v0, 7  ;;  %337 = vperm.xlu0 %561, %v235_v7   ;;  %vm381_vm4 = vcmask 0  }
  0x35   : > { %v241_v5 = vunpack.c.0.s8 %v240_v3  ;;  %s839_s15 = smov (!%p224_p7, %s640_s15), 1 }
  0x36   : > { %s495_s23 = sshll.u32 %s839_s15, 1  ;;  %v323_v53 = vsub.s32 0, %v776_v4  ;;  %v327_v54 = vsub.s32 1, %v776_v4  ;;  %s234_s10 = scalar_lea.vmem %s825_s3, %s839_s15 }
  0x37   : > { %v244_v6 = vsub.s32 %v241_v5, %v776_v4  ;;  %s230_s7 = scalar_lea.vmem %s824_s2, %s495_s23  ;;  %382 = vst.msk [vmem:[%s234_s10] sm:$0x1] %vm381_vm4, %v653_v60 }
  0x38   : > { %v237_v55 = vld [vmem:[%s230_s7] sm:$0x3] }
  0x39   : > { %v245_v9 = vrot.slane %v236_v8, %v244_v6  ;;  %v324_v56 = vrot.slane %v237_v55, %v323_v53  ;;  %v328_v57 = vrot.slane %v237_v55, %v327_v54 }
  0x3b   : > { %v246_v10 = vcombine.high %v245_v9, %v245_v9  ;;  %v250_v11 = vsel %vm249_vm0, %v245_v9, -inf  ;;  %vm329_vm1 = vcmp.eq.s32.totalorder %v776_v4, %v324_v56  ;;  %vm330_vm2 = vcmp.eq.s32.totalorder %v776_v4, %v328_v57 }
  0x3c   : > { %v251_v12 = vrot.slane %v250_v11, 4  ;;  %v496_v61 = vsel %vm329_vm1, 1.0, %v653_v60  ;;  %v497_v62 = vsel %vm330_vm2, 1.0, %v653_v60 }
  0x3d   : > { %v257_v13 = vsel %vm249_vm0, %v246_v10, -inf }
  0x3e   : > { %v258_v14 = vrot.slane %v257_v13, 4  ;;  %v252_v15 = vmax.f32 %v250_v11, %v251_v12 }
  0x40   : > { %v259_v16 = vmax.f32 %v257_v13, %v258_v14  ;;  %v253_v17 = vrot.slane %v252_v15, 2 }
  0x42   : > { %v260_v18 = vrot.slane %v259_v16, 2  ;;  %v254_v19 = vmax.f32 %v252_v15, %v253_v17 }
  0x44   : > { %v261_v20 = vmax.f32 %v259_v16, %v260_v18  ;;  %v255_v21 = vrot.slane %v254_v19, 1 }
  0x46   : > { %v262_v22 = vrot.slane %v261_v20, 1  ;;  %v256_v23 = vmax.f32 %v254_v19, %v255_v21 }
  0x48   : > { %v263_v24 = vmax.f32 %v261_v20, %v262_v22 }
  0x4a   : > { %v266_v25 = vcombine.low %v256_v23, %v263_v24 }
  0x4c   : > { %v273_v26 = vrot.slane %v266_v25, %v244_v6 }
  0x4e   : > { %v275_v27 = vsub.f32 %v236_v8, %v273_v26 }
  0x50   : > { %v276_v28 = vmul.f32 1.442695, %v275_v27 }
  0x52   : > { %562 = vpow2.f32 %v276_v28 }
  0x5c   : > { %v563_v29 = vpop.eup %562 }
  0x5d   : > { %v285_v30 = vrot.slane %v563_v29, %v244_v6 }
  0x5f   : > { %v286_v31 = vcombine.high %v285_v30, %v285_v30  ;;  %v289_v32 = vsel %vm249_vm0, %v285_v30, 0.0 }
  0x60   : > { %v290_v34 = vrot.slane %v289_v32, 4 }
  0x61   : > { %v296_v33 = vsel %vm249_vm0, %v286_v31, 0.0 }
  0x62   : > { %v297_v35 = vrot.slane %v296_v33, 4  ;;  %v291_v36 = vadd.f32 %v290_v34, %v289_v32 }
  0x64   : > { %v298_v37 = vadd.f32 %v297_v35, %v296_v33  ;;  %v292_v38 = vrot.slane %v291_v36, 2 }
  0x66   : > { %v299_v39 = vrot.slane %v298_v37, 2  ;;  %v293_v40 = vadd.f32 %v292_v38, %v291_v36  ;;  %v383_v36 = vld [vmem:[%s234_s10] sm:$0x1] }
  0x68   : > { %v300_v41 = vadd.f32 %v299_v39, %v298_v37  ;;  %v294_v42 = vrot.slane %v293_v40, 1 }
  0x6a   : > { %v301_v43 = vrot.slane %v300_v41, 1  ;;  %v295_v44 = vadd.f32 %v294_v42, %v293_v40 }
  0x6c   : > { %v302_v45 = vadd.f32 %v301_v43, %v300_v41  ;;  %564 = vlog2.f32 %v295_v44 }
  0x6e   : > { %566 = vlog2.f32 %v302_v45 }
  0x76   : > { %v565_v46 = vpop.eup %564 }
  0x77   : > { %v304_v48 = vmul.f32 0.6931472, %v565_v46 }
  0x78   : > { %v567_v47 = vpop.eup %566 }
  0x79   : > { %v306_v49 = vmul.f32 0.6931472, %v567_v47  ;;  %v371_v14 = vadd.f32 1.0, %v304_v48 }
  0x7b   : > { %v309_v50 = vcombine.low %v304_v48, %v306_v49  ;;  %v372_v15 = vadd.f32 1.0, %v306_v49  ;;  %v373_v20 = vmul.f32 %v371_v14, %v371_v14 }
  0x7d   : > { %v316_v51 = vrot.slane %v309_v50, %v244_v6  ;;  %v374_v21 = vmul.f32 %v372_v15, %v372_v15 }
  0x7f   : > { %v318_v52 = vsub.f32 %v275_v27, %v316_v51 }
  0x81   : > { %v347_v58 = vrot.slane %v318_v52, %v244_v6 }
  0x83   : > { %v348_v59 = vcombine.high %v347_v58, %v347_v58 }
  0xb3   : > { %v338_v63 = vpop.permute.xlu0 %337 }
  0xb4   : > { %v351_v0 = vmul.f32 %v347_v58, %v338_v63  ;;  %v352_v1 = vmul.f32 %v348_v59, %v338_v63 }
  0xb6   : > { %v353_v2 = vmul.f32 %v496_v61, %v351_v0  ;;  %v354_v3 = vmul.f32 %v497_v62, %v352_v1 }
  0xb8   : > { %v355_v5 = vsel %vm249_vm0, %v353_v2, 0.0  ;;  %v362_v7 = vsel %vm249_vm0, %v354_v3, 0.0 }
  0xb9   : > { %v356_v8 = vrot.slane %v355_v5, 4  ;;  %v363_v9 = vrot.slane %v362_v7, 4 }
  0xbb   : > { %v357_v6 = vadd.f32 %v356_v8, %v355_v5  ;;  %v364_v10 = vadd.f32 %v363_v9, %v362_v7 }
  0xbd   : > { %v358_v11 = vrot.slane %v357_v6, 2  ;;  %v365_v12 = vrot.slane %v364_v10, 2 }
  0xbf   : > { %v359_v4 = vadd.f32 %v358_v11, %v357_v6  ;;  %v366_v13 = vadd.f32 %v365_v12, %v364_v10 }
  0xc1   : > { %v360_v16 = vrot.slane %v359_v4, 1  ;;  %v367_v17 = vrot.slane %v366_v13, 1 }
  0xc3   : > { %v361_v18 = vadd.f32 %v360_v16, %v359_v4  ;;  %v368_v19 = vadd.f32 %v367_v17, %v366_v13 }
  0xc5   : > { %v369_v22 = vsub.f32 0.0, %v361_v18  ;;  %v370_v23 = vsub.f32 0.0, %v368_v19 }
  0xc7   : > { %v375_v24 = vmul.f32 %v373_v20, %v369_v22  ;;  %v376_v25 = vmul.f32 %v374_v21, %v370_v23 }
  0xc9   : > { %v385_v26 = vsel %vm384_vm3, %v375_v24, 0.0  ;;  %v386_v27 = vsel %vm384_vm3, %v376_v25, 0.0 }
  0xca   : > { %v387_v28 = vadd.f32 %v386_v27, %v385_v26 }
  0xcc   : > { %388 = vadd.xlane.f32.xlu0 %v387_v28 }
 0x159   : > { %v389_v29 = vpop.xlane.xlu0 %388 }
 0x15a   : > { %v390_v30 = vrot.slane %v389_v29, 4 }
 0x15c   : > { %v391_v31 = vadd.f32 %v390_v30, %v389_v29 }
 0x15e   : > { %v392_v32 = vrot.slane %v391_v31, 2 }
 0x160   : > { %v393_v33 = vadd.f32 %v392_v32, %v391_v31 }
 0x162   : > { %v394_v34 = vrot.slane %v393_v33, 1 }
 0x164   : > { %v395_v35 = vadd.f32 %v394_v34, %v393_v33 }
 0x166   : > { %501 = vpush %v395_v35 }
 0x197   : > { %s502_s11 = spop %501 }
 0x198   : > { %v397_v37 = vstv %s502_s11 }
 0x199   : > { %v398_v38 = vadd.f32 %v397_v37, %v383_v36 }
 0x19b   : > { %400 = vst.msk [vmem:[%s234_s10] sm:$0x1] %vm381_vm4, %v398_v38 }
 0x19c PF: > { %s16_s17 = sadd.s32 1, %s648_s17   ;;  %s831_s12 = smov %s632_s13 }
 0x19d   : > { %p13_p9 = scmp.ge.s32.totalorder %s16_s17, 4   ;;  %s832_s13 = smov %s636_s14 }
 0x19e   : > { %s833_s14 = smov %s723_s24  ;;  %s834_s15 = smov %s644_s16 }
 0x19f   : > { %s835_s16 = smov %s837_s19  ;;  %15 = sbr.rel (!%p13_p9) target bundleno = 4 (0x4), region = 79 }
 0x1a6   :  { %418 = vsyncpa [#allocation3], 1 }
 0x1a7   :  { %420 = vsyncpa [#allocation3 + $0x1], 1 }

</bundles_post_ra>
